<compile_context>
chip_gen: v7x
topology: tpu7x:2x2x1
jax: 0.10.0
libtpu: 0.0.40
codegen_flags: <defaults>
</compile_context>

<pallas_src>
import jax
import jax.numpy as jnp
from jax.experimental import pallas as pl
from jax.experimental.pallas import tpu as pltpu


def _squeeze_kernel(x_ref, w_ref, bias_ref, o_ref):
    # x_ref:    (Nb, C_in, T)   NCHW activation tile, spatial on lanes
    # w_ref:    (C_out, C_in)   BN-scale-folded 1x1 conv weight (resident)
    # bias_ref: (C_out, 1)      folded BN bias (f32), broadcast along lanes
    # o_ref:    (Nb, C_out, T)
    w = w_ref[...]
    b = bias_ref[...]
    # Static (small) loop over batched images in this block; each iteration
    # is one MXU matmul with lane-dense output.
    for i in range(x_ref.shape[0]):
        y = jnp.dot(w, x_ref[i], preferred_element_type=jnp.float32)
        o_ref[i] = jnp.maximum(y + b, 0.0).astype(o_ref.dtype)


def squeeze_forward(x_nchw, conv_w, bn_gamma, bn_beta, bn_mean, bn_var,
                    eps=1e-5, max_tile_hw=32768):
    """x_nchw: (N, C_in, H, W); conv_w: (C_out, C_in, 1, 1)."""
    N, C_in, H, W = x_nchw.shape
    C_out = conv_w.shape[0]
    HW = H * W
    dtype = x_nchw.dtype
    itemsize = jnp.dtype(dtype).itemsize

    # Fold eval-mode BN into the conv: y = (scale * W) x + (beta - mean*scale)
    scale = bn_gamma / jnp.sqrt(bn_var + eps)                     # (C_out,)
    w_mat = (conv_w.reshape(C_out, C_in) * scale[:, None]).astype(dtype)
    bias = (bn_beta - bn_mean * scale).reshape(C_out, 1).astype(jnp.float32)

    # --- Per-generation VMEM budget -------------------------------------
    try:
        vmem_cap = int(pltpu.get_tpu_info().vmem_capacity_bytes)
    except Exception:  # pragma: no cover - conservative fallback (v7x-sized)
        vmem_cap = 64 << 20
    budget = vmem_cap // 4  # for the double-buffered x/out tiles only

    # --- Balanced spatial tiling (no big pads, waste <= 127 lanes) -------
    HW128 = pl.cdiv(HW, 128) * 128
    per_col_bytes = 2 * (C_in + C_out) * itemsize      # 2x buffers, x + out
    cap = max(128, min(max_tile_hw, (budget // per_col_bytes) // 128 * 128))
    n_tiles = pl.cdiv(HW128, cap)

    # Keep enough grid steps for multi-TensorCore chips (v7x has 2 TCs).
    min_steps = 4
    if N * n_tiles < min_steps:
        n_tiles = max(1, min(HW128 // 128, pl.cdiv(min_steps, N)))
    tile_hw = pl.cdiv(pl.cdiv(HW128, n_tiles), 128) * 128
    n_tiles = pl.cdiv(HW, tile_hw)        # actual grid extent (ragged tail ok)

    # --- Batch several images per step for small spatial extents ---------
    Nb = 1
    if HW128 <= 1024 and N > 1:
        Nb = max(1, min(N, 2048 // HW128))
        total_steps = N * n_tiles
        while Nb > 1 and pl.cdiv(N, Nb) * n_tiles < min(min_steps, total_steps):
            Nb //= 2
    n_batch_blocks = pl.cdiv(N, Nb)

    grid = (n_batch_blocks, n_tiles)
    x_flat = x_nchw.reshape(N, C_in, HW)

    tile_bytes = Nb * (C_in + C_out) * tile_hw * itemsize
    vmem_limit = int(max(16 << 20,
                         min(vmem_cap * 3 // 4, 2 * tile_bytes + (8 << 20))))

    out_flat = pl.pallas_call(
        _squeeze_kernel,
        out_shape=jax.ShapeDtypeStruct((N, C_out, HW), dtype),
        grid_spec=pltpu.PrefetchScalarGridSpec(
            num_scalar_prefetch=0,
            grid=grid,
            in_specs=[
                pl.BlockSpec((Nb, C_in, tile_hw), lambda n, j: (n, 0, j)),
                pl.BlockSpec((C_out, C_in), lambda n, j: (0, 0)),
                pl.BlockSpec((C_out, 1), lambda n, j: (0, 0)),
            ],
            out_specs=pl.BlockSpec((Nb, C_out, tile_hw),
                                   lambda n, j: (n, 0, j)),
        ),
        compiler_params=pltpu.CompilerParams(
            dimension_semantics=("parallel", "parallel"),
            vmem_limit_bytes=vmem_limit),
        cost_estimate=pl.CostEstimate(
            flops=2 * N * HW * C_in * C_out,
            transcendentals=0,
            bytes_accessed=itemsize * (N * HW * (C_in + C_out)
                                       + C_in * C_out)),
    )(x_flat, w_mat, bias)

    return out_flat.reshape(N, C_out, H, W)


if __name__ == "__main__":
    key = jax.random.PRNGKey(0)
    k_x, k_w, k_g, k_b, k_m, k_v = jax.random.split(key, 6)

    N, C_in, H, W = 2, 4, 16, 16
    C_out = 8

    x = jax.random.normal(k_x, (N, C_in, H, W), dtype=jnp.float32)
    conv_w = jax.random.normal(k_w, (C_out, C_in, 1, 1), dtype=jnp.float32) * 0.1
    bn_gamma = 1.0 + 0.1 * jax.random.normal(k_g, (C_out,), dtype=jnp.float32)
    bn_beta = 0.1 * jax.random.normal(k_b, (C_out,), dtype=jnp.float32)
    bn_mean = 0.1 * jax.random.normal(k_m, (C_out,), dtype=jnp.float32)
    bn_var = jnp.abs(jax.random.normal(k_v, (C_out,), dtype=jnp.float32)) + 0.5

    out = squeeze_forward(x, conv_w, bn_gamma, bn_beta, bn_mean, bn_var)
    jax.block_until_ready(out)

    # Reference check in plain JAX (same math path, no Pallas).
    ref = jnp.einsum('nchw,oc->nohw', x, conv_w.reshape(C_out, C_in))
    s = bn_gamma / jnp.sqrt(bn_var + 1e-5)
    ref = ref * s[None, :, None, None] + (bn_beta - bn_mean * s)[None, :, None, None]
    ref = jnp.maximum(ref, 0.0)
    assert out.shape == (N, C_out, H, W)
    assert jnp.allclose(out, ref, atol=1e-5, rtol=1e-5)

    print("KERNEL_OK")
</pallas_src>

<mosaic_0001>
module attributes {stable_mosaic.version = 11 : i64} {
  func.func @_squeeze_kernel(%arg0: i32, %arg1: i32, %arg2: memref<1x4x128xf32, #tpu.memory_space<vmem>>, %arg3: memref<8x4xf32, #tpu.memory_space<vmem>>, %arg4: memref<8x1xf32, #tpu.memory_space<vmem>>, %arg5: memref<1x8x128xf32, #tpu.memory_space<vmem>>) attributes {dimension_semantics = [#tpu.dimension_semantics<parallel>, #tpu.dimension_semantics<parallel>], iteration_bounds = array<i64: 2, 2>, scalar_prefetch = 0 : i64, scratch_operands = 0 : i64, tpu.core_type = #tpu.core_type<tc>, window_params = [{transform_indices = @transform_0, window_bounds = array<i64: 1, 4, 128>}, {pipeline_mode = #tpu.pipeline_mode<synchronous>, transform_indices = @transform_1, window_bounds = array<i64: 8, 4>}, {pipeline_mode = #tpu.pipeline_mode<synchronous>, transform_indices = @transform_2, window_bounds = array<i64: 8, 1>}, {transform_indices = @transform_3, window_bounds = array<i64: 1, 8, 128>}]} {
    %c0 = arith.constant 0 : index
    %c0_0 = arith.constant 0 : index
    %0 = vector.load %arg3[%c0, %c0_0] : memref<8x4xf32, #tpu.memory_space<vmem>>, vector<8x4xf32>
    %c0_1 = arith.constant 0 : index
    %c0_2 = arith.constant 0 : index
    %1 = vector.load %arg4[%c0_1, %c0_2] : memref<8x1xf32, #tpu.memory_space<vmem>>, vector<8x1xf32>
    %c0_3 = arith.constant 0 : index
    %c0_4 = arith.constant 0 : index
    %c0_5 = arith.constant 0 : index
    %2 = vector.load %arg2[%c0_3, %c0_4, %c0_5] : memref<1x4x128xf32, #tpu.memory_space<vmem>>, vector<1x4x128xf32>
    %3 = vector.shape_cast %2 : vector<1x4x128xf32> to vector<4x128xf32>
    %cst = arith.constant dense<0.000000e+00> : vector<8x128xf32>
    %4 = tpu.matmul %0, %3, %cst {dimension_numbers = #tpu.dot_dimension_numbers<[1], [0], [0], [1], [0, 0, 1, 1], [], []>} : vector<8x4xf32>, vector<4x128xf32>, vector<8x128xf32> -> vector<8x128xf32>
    %5 = vector.broadcast %1 : vector<8x1xf32> to vector<8x128xf32>
    %6 = arith.addf %4, %5 : vector<8x128xf32>
    %cst_6 = arith.constant 0.000000e+00 : f32
    %7 = vector.broadcast %cst_6 : f32 to vector<8x128xf32>
    %8 = arith.maximumf %6, %7 : vector<8x128xf32>
    %c0_7 = arith.constant 0 : index
    %c0_8 = arith.constant 0 : index
    %c0_9 = arith.constant 0 : index
    %9 = vector.load %arg5[%c0_7, %c0_8, %c0_9] : memref<1x8x128xf32, #tpu.memory_space<vmem>>, vector<1x8x128xf32>
    %10 = vector.shape_cast %9 : vector<1x8x128xf32> to vector<8x128xf32>
    %11 = vector.shape_cast %8 : vector<8x128xf32> to vector<1x8x128xf32>
    tpu.vector_store %arg5[%c0_7, %c0_8, %c0_9], %11 {strides = array<i32>} : memref<1x8x128xf32, #tpu.memory_space<vmem>>, vector<1x8x128xf32>,
    return
  }
  func.func @transform_0(%arg0: i32, %arg1: i32) -> (i32, i32, i32) {
    %c0_i32 = arith.constant 0 : i32
    %c0_i32_0 = arith.constant 0 : i32
    return %arg0, %c0_i32, %arg1 : i32, i32, i32
  }
  func.func @transform_1(%arg0: i32, %arg1: i32) -> (i32, i32) {
    %c0_i32 = arith.constant 0 : i32
    %c0_i32_0 = arith.constant 0 : i32
    %c0_i32_1 = arith.constant 0 : i32
    return %c0_i32, %c0_i32_0 : i32, i32
  }
  func.func @transform_2(%arg0: i32, %arg1: i32) -> (i32, i32) {
    %c0_i32 = arith.constant 0 : i32
    %c0_i32_0 = arith.constant 0 : i32
    %c0_i32_1 = arith.constant 0 : i32
    return %c0_i32, %c0_i32_0 : i32, i32
  }
  func.func @transform_3(%arg0: i32, %arg1: i32) -> (i32, i32, i32) {
    %c0_i32 = arith.constant 0 : i32
    %c0_i32_0 = arith.constant 0 : i32
    return %arg0, %c0_i32, %arg1 : i32, i32, i32
  }
}

</mosaic_0001>

<bundles_post_ra>
// kernel: tpu_custom_call.1
= control target key start
LH: loop header
LB: loop body
LE: loop exit
PB: predicated region body
PF: predicated region fallthrough
CT: control target
= control target key end

     0   :  { %8 = vsyncpa [#allocation3], 0  ;;  %s736_s0 = inlined_call_operand.vmem [shape: f32[2,4,256], index: 0, kind: input, shape index: {}]   ;;  %s737_s1 = inlined_call_operand.vmem [shape: f32[8,4], index: 1, kind: input, shape index: {}]   ;;  %s738_s2 = inlined_call_operand.vmem [shape: f32[8,1], index: 2, kind: input, shape index: {}]   ;;  %s739_s3 = inlined_call_operand.hbm [shape: f32[2,8,256], index: 3, kind: output, shape index: {}]  }
   0x1   :  { %10 = vsyncpa [#allocation3 + $0x1], 0  ;;  %s593_s12 = smov 0   ;;  %s595_s13 = smov 0  }
   0x2   :  { %s597_s14 = smov 0   ;;  %s599_s15 = smov 0  }
   0x3   :  { %s601_s16 = smov 0   ;;  %s603_s17 = smov 0  }
   0x4   :  { %s605_s18 = smov 0   ;;  %s607_s19 = smov 0  }
   0x5 LB: > { %s376_s20 = sadd.s32 4294967295, %s567_s19   ;;  %s377_s21 = sadd.s32 4294967294, %s567_s19   ;;  %s567_s19 = sphi %s607_s19, %s16_s19   ;;  %s563_s18 = sphi %s605_s18, %s748_s18   ;;  %s559_s17 = sphi %s603_s17, %s747_s17   ;;  %s555_s16 = sphi %s601_s16, %s746_s16   ;;  %s551_s15 = sphi %s599_s15, %s745_s15   ;;  %s547_s14 = sphi %s597_s14, %s744_s14   ;;  %s543_s13 = sphi %s595_s13, %s743_s13   ;;  %s539_s12 = sphi %s593_s12, %s742_s12  }
   0x6   : > { %s25_s22 = sadd.s32 1, %s559_s17  ;;  %s28_s23 = sadd.s32 1, %s563_s18 }
   0x7   : > { %p26_p0 = scmp.ge.s32.totalorder %s25_s22, 2  ;;  %p117_p1 = scmp.ne.s32.totalorder %s547_s14, %s543_s13 }
   0x8   : > { %p118_p2 = scmp.eq.s32.totalorder %s376_s20, 3  ;;  %p123_p5 = scmp.ne.s32.totalorder %s543_s13, %s539_s12 }
   0x9   : > { %s750_s22 = smov (%p26_p0, %s25_s22), 0  ;;  %s752_s23 = smov (!%p26_p0, %s28_s23), %s563_s18 }
   0xa   : > { %s103_s24 = ssub.s32 %s559_s17, %s750_s22  ;;  %p644_p3 = por %p118_p2, %p117_p1 }
   0xb   : > { %p30_p4 = scmp.ge.s32.totalorder %s752_s23, 2  ;;  %p124_p6 = scmp.eq.s32.totalorder %s377_s21, 3 }
   0xc   : > { %p380_p7 = scmp.ge.s32.totalorder %s567_s19, 1  ;;  %p159_p9 = scmp.lt.s32.totalorder %s567_s19, 5 }
   0xd   : > { %s754_s23 = smov (%p30_p4, %s752_s23), 0  ;;  %p653_p8 = por %p124_p6, %p123_p5 }
   0xe   : > { %s102_s27 = ssub.s32 %s563_s18, %s754_s23  ;;  %s107_s28 = sadd.s32 1, %s547_s14 }
   0xf   : > { %s104_s29 = sor.u32 %s103_s24, %s102_s27  ;;  %p160_p10 = pnand %p380_p7, %p159_p9 }
  0x10   : > { %p105_p11 = scmp.eq.s32.totalorder %s104_s29, 0  ;;  %p186_p12 = scmp.lt.s32.totalorder (!%p160_p10), %s555_s16, 1  ;;  %v569_v0 = vmov (!%p160_p10), 0.0   ;;  %vm570_vm0 = vmmov (!%p160_p10), 0   ;;  %v195_v1 = vld [vmem:[%s738_s2] sm:$0xff] (!%p160_p10)  ;;  %v571_v2 = vmov (!%p160_p10), 0  }
  0x11   : > { %163 = sbr.rel (%p160_p10) target bundleno = 262 (0x106), region = 32  ;;  %p188_p13 = scmp.lt.s32.totalorder (!%p160_p10), %s551_s15, 1  ;;  %393 = vmatprep.subr.mxu0 (!%p160_p10), %v569_v0  ;;  %395 = vmatprep.mubr.msk.f32.mxu0 (!%p160_p10), %vm570_vm0, %v569_v0  ;;  %vm206_vm1 = vcmask (!%p160_p10), 1043456   ;;  %v194_v3 = vld [vmem:[%s737_s1] sm:$0xff] (!%p160_p10)  ;;  %vm202_vm2 = vcmask (!%p160_p10), 31744  }
  0x12   : > { %s662_s30 = scalar_select %p105_p11, %s547_s14, %s107_s28  }
  0x13   : > { %472 = vset.pattern.permute.xlu0 (!%p160_p10), %v571_v2  ;;  %s183_s28 = sand.u32 (!%p160_p10), 1, %s543_s13   ;;  %s387_s4 = sshll.u32 (!%p160_p10), %s555_s16, 1 }
  0x14   : > { %199 = vperm.xlu0 (!%p160_p10), %472, %v195_v1   ;;  %s381_s29 = sshll.u32 (!%p160_p10), %s183_s28, 3  ;;  %s294_s5 = sadd.s32 (!%p160_p10), %s551_s15, %s387_s4 }
  0x15   : > { %s572_s20 = smov (!%p160_p10), [#allocation2]  }
  0x18   : > { %s187_s6 = scalar_select %p186_p12, %s555_s16, 1 }
  0x19   : > { %s189_s7 = scalar_select %p188_p13, %s551_s15, 1 }
  0x1a   : > { %s382_s8 = sshll.u32 %s187_s6, 1  ;;  %s388_s6 = sshll.u32 %s294_s5, 7 }
  0x1b   : > { %s191_s9 = sadd.s32 %s382_s8, %s189_s7  ;;  %s185_s7 = scalar_lea.vmem [#allocation2], %s381_s29 }
  0x1c   : > { %s383_s10 = sshll.u32 %s191_s9, 2  ;;  %s298_s8 = sshll.u32 %s185_s7, 4  ;;  %s685_s8 = int_to_ptr.vmem [resolvable:$true] %s298_s8 }
  0x1d   : > { %s193_s21 = scalar_lea.vmem %s736_s0, %s383_s10  ;;  %s683_s11 = scalar_lea.hbm %s739_s3, %s388_s6 }
  0x1e   : > { %v196_v4 = vld [vmem:[%s193_s21] sm:$0xf]  ;;  %s283_s15 = scalar_lea.sflag [#allocation3], %s183_s28  ;;  %s473_s16 = scalar_lea.vmem %s685_s8, 128 }
  0x1f   : > { %394 = vmatpush3.msk.msra.mxu0 %vm206_vm1, %v196_v4  ;;  %p474_p0 = scmp.ne.s32.totalorder %s685_s8, %s473_s16  ;;  %s477_s21 = sshll.u32 %s572_s20, 4  ;;  %s478_s21 = int_to_ptr.vmem [resolvable:$false] %s477_s21 }
  0x20   : > { %396 = vmatmul.mubr.msk.f32.vlgmr.msra.gmra.mrb[0].mxu0 %vm202_vm2, %v194_v3  ;;  %s479_s24 = scalar_lea.vmem %s478_s21, 256  ;;  %p480_p4 = scmp.lt.s32.totalorder %s685_s8, %s478_s21 }
  0x21   : > { %p475_p1 = pnand %p474_p0, %p644_p3  ;;  %p481_p5 = scmp.lt.s32.totalorder %s479_s24, %s473_s16 }
  0x23   : > { %p476_p2 = pneg %p475_p1  ;;  %p482_p6 = por %p481_p5, %p480_p4 }
  0x25   : > { %p483_p7 = pnand %p482_p6, %p476_p2 }
  0x93   : > { %v200_v5 = vpop.permute.xlu0 %199 }
  0xf3   : > { %v276_v6 = vpop.f32.mrb[0].mxu0 }
  0xf4   : > { %v277_v7 = vadd.f32 %v276_v6, %v200_v5  ;;  %v397_v8 = vpop.f32.mrb[1].mxu0 }
  0xf6   : > { %v280_v9 = vmax.f32 %v277_v7, 0.0 }
  0xf8   : > { %281 = vst [vmem:[%s185_s7] sm:$0xff] %v280_v9 }
  0xf9   : > { %486 = shalt.err (!%p483_p7)
}
  0xfa   : > { %s487_s27 = scalar_lea.hbm %s683_s11, 128  ;;  %s491_s4 = scalar_lea.hbm %s739_s3, 512 }
  0xfb   : > { %p488_p9 = scmp.ne.s32.totalorder %s683_s11, %s487_s27  ;;  %p492_p12 = scmp.lt.u32.totalorder %s683_s11, %s739_s3 }
  0xfc   : > { %p493_p13 = scmp.lt.u32.totalorder %s491_s4, %s487_s27  ;;  %p495_p1 = scmp.lt.u32.totalorder %s487_s27, %s683_s11 }
  0xfd   : > { %p489_p10 = pnand %p488_p9, %p644_p3 }
  0xfe   : > { %p494_p0 = por %p493_p13, %p492_p12 }
  0xff   : > { %p490_p11 = pneg %p489_p10 }
 0x100   : > { %p496_p2 = por %p495_p1, %p494_p0 }
 0x102   : > { %p497_p4 = pnand %p496_p2, %p490_p11 }
 0x104   : > { %500 = shalt.err (!%p497_p4)
}
 0x105   : > { %398 = dma.vmem_to_hbm [thread:$0]  (%p644_p3), %s685_s8, 128, %s683_s11, %s283_s15  }
 0x106 PF: > { %p404_p5 = scmp.ge.s32.totalorder %s567_s19, 2  ;;  %s310_s7 = sand.u32 1, %s539_s12  }
 0x107   : > { %s311_s9 = scalar_lea.sflag [#allocation3], %s310_s7 }
 0x108   : > { %p401_p6 = pnand %p404_p5, %p653_p8 }
 0x10a   : > { %534 = dma.done.wait (!%p401_p6), %s311_s9, 128  }
 0x10b   : > { %536 = vsyncadd (!%p401_p6), %s311_s9, 4294967168  ;;  %s16_s19 = sadd.s32 1, %s567_s19   ;;  %s742_s12 = smov %s543_s13 }
 0x10c   : > { %p13_p7 = scmp.ge.s32.totalorder %s16_s19, 6   ;;  %s743_s13 = smov %s547_s14 }
 0x10d   : > { %s744_s14 = smov %s662_s30  ;;  %s745_s15 = smov %s559_s17 }
 0x10e   : > { %s746_s16 = smov %s563_s18  ;;  %s747_s17 = smov %s750_s22 }
 0x10f   : > { %s748_s18 = smov %s754_s23  ;;  %15 = sbr.rel (!%p13_p7) target bundleno = 5 (0x5), region = 67 }
 0x116   :  { %316 = vsyncpa [#allocation3], 1 }
 0x117   :  { %318 = vsyncpa [#allocation3 + $0x1], 1 }

</bundles_post_ra>
